<compile_context>
chip_gen: v5e
topology: v5e:2x2
jax: 0.10.0
libtpu: 0.0.40
codegen_flags: <defaults>
</compile_context>

<pallas_src>
import jax
import jax.numpy as jnp
from jax.experimental import pallas as pl
from jax.experimental.pallas import tpu as pltpu


def _round_up(x, m):
    return ((x + m - 1) // m) * m


def _pick_batch_tile(B: int) -> int:
    # Big tiles amortize the ~0.35us per-grid-step overhead (~85% of HBM
    # roofline at 512-row tiles vs ~63% at 256).  Keep >= 2 grid steps when
    # the batch allows so 'parallel' can shard across v7x's two TensorCores.
    tb = min(512, _round_up(B, 8))
    if B > 16 and _round_up(B, tb) // tb < 2:
        tb = _round_up(pl.cdiv(B, 2), 8)
    return tb


# ---------------------------------------------------------------------------
# Path 1 (tiny vocab): fused gather+mean-pool as counts @ table, all in VMEM.
# ---------------------------------------------------------------------------
def _counts_pool_head_kernel(x_ref, emb_ref, w_ref, b_ref, o_ref):
    # ModelWrapper.forward: input.long() (truncate toward zero, like torch).
    ids = x_ref[...].astype(jnp.int32)                       # [TB, S]
    TB, S = ids.shape
    Vr = emb_ref.shape[0]

    # pooled = (1/S) * counts @ table, counts[b, v] = #{s : ids[b, s] == v}.
    # Accumulate one [TB, Vr] int32 tile over S (never materialize the
    # [TB, S, Vr] one-hot); exact integer counts (exact in bf16 for S <= 256),
    # single cast right before the MXU dot.  S is static -> unrolled VALU adds.
    lane_iota = jax.lax.broadcasted_iota(jnp.int32, (TB, Vr), 1)
    counts = jnp.zeros((TB, Vr), jnp.int32)
    for s in range(S):
        tok = ids[:, s:s + 1]                                # [TB, 1] static lane slice
        counts = counts + (lane_iota == tok).astype(jnp.int32)

    pooled = jnp.dot(counts.astype(emb_ref.dtype), emb_ref[...],
                     preferred_element_type=jnp.float32)     # [TB, Hp] f32
    pooled = pooled * jnp.float32(1.0 / S)                   # fold 1/S here (f32)

    logits = jnp.dot(pooled.astype(w_ref.dtype), w_ref[...],
                     preferred_element_type=jnp.float32) + b_ref[...]
    o_ref[...] = logits.astype(o_ref.dtype)


# ---------------------------------------------------------------------------
# Path 2 (realistic vocab / v7x): table stays in HBM, rows are gathered with
# scalar-prefetched ids + double-buffered manual DMAs.
# ---------------------------------------------------------------------------
def _gather_pool_head_kernel(ids_ref, emb_hbm, w_ref, b_ref, o_ref,
                             row_buf, sem, pooled_acc):
    # ids_ref    : SMEM [Bp, S] int32 (scalar-prefetched; already .long()'d,
    #              OOR remapped to the all-zero row).
    # emb_hbm    : HBM  [Vr, Hp]  (memory_space=pl.ANY; never whole in VMEM).
    # row_buf    : VMEM [2, 1, Hp] double-buffered row landing pad.
    # sem        : DMA semaphores [2].
    # pooled_acc : VMEM [TB, Hp] f32 accumulator.
    bt = pl.program_id(0)
    TB = o_ref.shape[0]
    S = ids_ref.shape[1]
    n_tok = TB * S                                           # static

    def token_row(t):
        return ids_ref[bt * TB + t // S, t % S]

    def start_fetch(t, slot):
        pltpu.make_async_copy(emb_hbm.at[pl.ds(token_row(t), 1), :],
                              row_buf.at[slot], sem.at[slot]).start()

    pooled_acc[...] = jnp.zeros_like(pooled_acc)
    start_fetch(0, 0)

    sub_iota = jax.lax.broadcasted_iota(jnp.int32, (TB, 1), 0)

    @pl.loop(0, n_tok)
    def _(t):
        slot = jax.lax.rem(t, 2)
        pltpu.make_async_copy(emb_hbm.at[pl.ds(0, 1), :],
                              row_buf.at[slot], sem.at[slot]).wait()

        @pl.when(t + 1 < n_tok)
        def _():
            start_fetch(t + 1, 1 - slot)

        # Scatter-add the fetched embedding row into its batch row without a
        # dynamic sublane store: masked broadcast-add on the VPU.
        row = row_buf[slot].astype(jnp.float32)              # [1, Hp]
        pooled_acc[...] += jnp.where(sub_iota == (t // S), row, 0.0)

    pooled = pooled_acc[...] * jnp.float32(1.0 / S)
    logits = jnp.dot(pooled.astype(w_ref.dtype), w_ref[...],
                     preferred_element_type=jnp.float32) + b_ref[...]
    o_ref[...] = logits.astype(o_ref.dtype)


# ---------------------------------------------------------------------------
# Host-side wrappers.
# ---------------------------------------------------------------------------
def prepare_params(emb_table, w, b, param_dtype=jnp.float32):
    """Pad + cast the model weights ONCE (hoisted out of the per-call forward).

    SHAP calls forward thousands of times with identical weights; re-padding
    and re-casting V*H elements per call would rival the kernel's HBM traffic.
    """
    V, H = emb_table.shape
    assert w.shape[0] == H
    C = w.shape[1]
    # +1 vocab row guarantees an all-zero row at index V for OOR / pad ids.
    # Lane dims padded to 128 (full MXU columns, lane-dense unmasked stores);
    # pad to 256 on v6e/v7x when real H/C allow (2x256x256 MXU).
    Vr = _round_up(V + 1, 128)
    Hp = _round_up(H, 128)
    Cp = _round_up(C, 128)
    emb_p = jnp.pad(emb_table, ((0, Vr - V), (0, Hp - H))).astype(param_dtype)
    w_p = jnp.pad(w, ((0, Hp - H), (0, Cp - C))).astype(param_dtype)
    b_p = jnp.pad(b.reshape(1, C), ((0, 0), (0, Cp - C))).astype(jnp.float32)
    return dict(emb=emb_p, w=w_p, b=b_p, V=V, H=H, C=C, Vr=Vr, Hp=Hp, Cp=Cp)


def model_wrapper_forward(x, params, impl=None):
    """x: [B, S] float token ids (possibly SHAP-perturbed). Returns [B, C] f32 logits."""
    B, S = x.shape
    V, C = params["V"], params["C"]
    Vr, Hp, Cp = params["Vr"], params["Hp"], params["Cp"]
    emb_p, w_p, b_p = params["emb"], params["w"], params["b"]

    if impl is None:
        # Algorithmic crossover: the counts path does O(B*S*Vr) VALU compares
        # and keeps the whole table in VMEM; for realistic vocabularies the
        # HBM gather path wins (and is required on v7x's 64 MiB VMEM).
        table_bytes = Vr * Hp * jnp.dtype(emb_p.dtype).itemsize
        impl = "counts" if (Vr <= 2048 and table_bytes <= (8 << 20)) else "gather"

    tb = _pick_batch_tile(B)
    Bp = _round_up(B, tb)
    cparams = pltpu.CompilerParams(
        dimension_semantics=("parallel",),        # v7x: shard batch over 2 TCs
        vmem_limit_bytes=32 * 1024 * 1024)

    if impl == "counts":
        # Pad rows carry id 0 -> counted into real vocab row 0; wasted compute
        # only, results discarded below.
        x_p = jnp.pad(x, ((0, Bp - B), (0, 0)))
        out = pl.pallas_call(
            _counts_pool_head_kernel,
            out_shape=jax.ShapeDtypeStruct((Bp, Cp), jnp.float32),
            grid=(Bp // tb,),
            in_specs=[
                pl.BlockSpec((tb, S), lambda i: (i, 0)),   # ids, tiled on batch
                pl.BlockSpec((Vr, Hp), lambda i: (0, 0),   # resident, single-buffered
                             pipeline_mode=pl.Buffered(1)),
                pl.BlockSpec((Hp, Cp), lambda i: (0, 0),
                             pipeline_mode=pl.Buffered(1)),
                pl.BlockSpec((1, Cp), lambda i: (0, 0),
                             pipeline_mode=pl.Buffered(1)),
            ],
            out_specs=pl.BlockSpec((tb, Cp), lambda i: (i, 0)),
            compiler_params=cparams,
        )(x_p, emb_p, w_p, b_p)
    else:
        ids = x.astype(jnp.int32)                                   # .long()
        ids = jnp.where((ids >= 0) & (ids < V), ids, V)             # OOR -> zero row
        ids_p = jnp.pad(ids, ((0, Bp - B), (0, 0)), constant_values=V)
        out = pl.pallas_call(
            _gather_pool_head_kernel,
            out_shape=jax.ShapeDtypeStruct((Bp, Cp), jnp.float32),
            grid_spec=pltpu.PrefetchScalarGridSpec(
                num_scalar_prefetch=1,
                grid=(Bp // tb,),
                in_specs=[
                    pl.BlockSpec(memory_space=pl.ANY),              # table in HBM
                    pl.BlockSpec((Hp, Cp), lambda i, ids: (0, 0),
                                 pipeline_mode=pl.Buffered(1)),
                    pl.BlockSpec((1, Cp), lambda i, ids: (0, 0),
                                 pipeline_mode=pl.Buffered(1)),
                ],
                out_specs=pl.BlockSpec((tb, Cp), lambda i, ids: (i, 0)),
                scratch_shapes=[
                    pltpu.VMEM((2, 1, Hp), emb_p.dtype),            # row double-buffer
                    pltpu.SemaphoreType.DMA((2,)),
                    pltpu.VMEM((tb, Hp), jnp.float32),              # pooled accumulator
                ]),
            compiler_params=cparams,
        )(ids_p, emb_p, w_p, b_p)

    return out[:B, :C]


def reference_forward(x, emb_table, w, b):
    ids = x.astype(jnp.int32)
    emb = emb_table[ids]                   # [B, S, H]
    pooled = emb.mean(axis=1)              # [B, H]
    return pooled @ w + b                  # [B, C]


if __name__ == "__main__":
    B, S = 2, 8          # batch, sequence length
    V, H, C = 32, 32, 4  # vocab, hidden, num classes

    key = jax.random.PRNGKey(0)
    k_ids, k_emb, k_w, k_b = jax.random.split(key, 4)

    # Input arrives as float (SHAP perturbations); cast to long inside forward.
    token_ids = jax.random.randint(k_ids, (B, S), 0, V)
    x = token_ids.astype(jnp.float32)

    emb_table = jax.random.normal(k_emb, (V, H), dtype=jnp.float32) * 0.1
    w = jax.random.normal(k_w, (H, C), dtype=jnp.float32) * 0.1
    b = jax.random.normal(k_b, (C,), dtype=jnp.float32) * 0.1

    # Weight prep done once (hoisted); f32 weights so logits match torch closely.
    params = prepare_params(emb_table, w, b, param_dtype=jnp.float32)
    ref = reference_forward(x, emb_table, w, b)

    fwd_counts = jax.jit(lambda xx: model_wrapper_forward(xx, params, impl="counts"))
    fwd_gather = jax.jit(lambda xx: model_wrapper_forward(xx, params, impl="gather"))

    out_c = jax.block_until_ready(fwd_counts(x))
    assert out_c.shape == (B, C)
    assert jnp.allclose(out_c, ref, atol=1e-4, rtol=1e-4), (out_c, ref)

    out_g = jax.block_until_ready(fwd_gather(x))
    assert out_g.shape == (B, C)
    assert jnp.allclose(out_g, ref, atol=1e-4, rtol=1e-4), (out_g, ref)

    print("KERNEL_OK")
</pallas_src>

<mosaic_0001>
module attributes {stable_mosaic.version = 11 : i64} {
  func.func @_counts_pool_head_kernel(%arg0: i32, %arg1: memref<8x8xf32, #tpu.memory_space<vmem>>, %arg2: memref<128x128xf32, #tpu.memory_space<vmem>>, %arg3: memref<128x128xf32, #tpu.memory_space<vmem>>, %arg4: memref<1x128xf32, #tpu.memory_space<vmem>>, %arg5: memref<8x128xf32, #tpu.memory_space<vmem>>) attributes {dimension_semantics = [#tpu.dimension_semantics<parallel>], iteration_bounds = array<i64: 1>, scalar_prefetch = 0 : i64, scratch_operands = 0 : i64, tpu.core_type = #tpu.core_type<tc>, window_params = [{transform_indices = @transform_0, window_bounds = array<i64: 8, 8>}, {pipeline_mode = #tpu.pipeline_mode<synchronous>, transform_indices = @transform_1, window_bounds = array<i64: 128, 128>}, {pipeline_mode = #tpu.pipeline_mode<synchronous>, transform_indices = @transform_2, window_bounds = array<i64: 128, 128>}, {pipeline_mode = #tpu.pipeline_mode<synchronous>, transform_indices = @transform_3, window_bounds = array<i64: 1, 128>}, {transform_indices = @transform_4, window_bounds = array<i64: 8, 128>}]} {
    %c0 = arith.constant 0 : index
    %c0_0 = arith.constant 0 : index
    %0 = vector.load %arg1[%c0, %c0_0] : memref<8x8xf32, #tpu.memory_space<vmem>>, vector<8x8xf32>
    %1 = arith.fptosi %0 : vector<8x8xf32> to vector<8x8xi32>
    %2 = tpu.iota {dimensions = array<i32: 1>} : vector<8x128xi32>
    %c0_i32 = arith.constant 0 : i32
    %3 = vector.broadcast %c0_i32 : i32 to vector<8x128xi32>
    %4 = vector.extract_strided_slice %1 {offsets = [0, 0], sizes = [8, 1], strides = [1, 1]} : vector<8x8xi32> to vector<8x1xi32>
    %5 = vector.broadcast %4 : vector<8x1xi32> to vector<8x128xi32>
    %6 = arith.cmpi eq, %2, %5 : vector<8x128xi32>
    %7 = arith.extui %6 : vector<8x128xi1> to vector<8x128xi32>
    %8 = arith.addi %3, %7 : vector<8x128xi32>
    %9 = vector.extract_strided_slice %1 {offsets = [0, 1], sizes = [8, 1], strides = [1, 1]} : vector<8x8xi32> to vector<8x1xi32>
    %10 = vector.broadcast %9 : vector<8x1xi32> to vector<8x128xi32>
    %11 = arith.cmpi eq, %2, %10 : vector<8x128xi32>
    %12 = arith.extui %11 : vector<8x128xi1> to vector<8x128xi32>
    %13 = arith.addi %8, %12 : vector<8x128xi32>
    %14 = vector.extract_strided_slice %1 {offsets = [0, 2], sizes = [8, 1], strides = [1, 1]} : vector<8x8xi32> to vector<8x1xi32>
    %15 = vector.broadcast %14 : vector<8x1xi32> to vector<8x128xi32>
    %16 = arith.cmpi eq, %2, %15 : vector<8x128xi32>
    %17 = arith.extui %16 : vector<8x128xi1> to vector<8x128xi32>
    %18 = arith.addi %13, %17 : vector<8x128xi32>
    %19 = vector.extract_strided_slice %1 {offsets = [0, 3], sizes = [8, 1], strides = [1, 1]} : vector<8x8xi32> to vector<8x1xi32>
    %20 = vector.broadcast %19 : vector<8x1xi32> to vector<8x128xi32>
    %21 = arith.cmpi eq, %2, %20 : vector<8x128xi32>
    %22 = arith.extui %21 : vector<8x128xi1> to vector<8x128xi32>
    %23 = arith.addi %18, %22 : vector<8x128xi32>
    %24 = vector.extract_strided_slice %1 {offsets = [0, 4], sizes = [8, 1], strides = [1, 1]} : vector<8x8xi32> to vector<8x1xi32>
    %25 = vector.broadcast %24 : vector<8x1xi32> to vector<8x128xi32>
    %26 = arith.cmpi eq, %2, %25 : vector<8x128xi32>
    %27 = arith.extui %26 : vector<8x128xi1> to vector<8x128xi32>
    %28 = arith.addi %23, %27 : vector<8x128xi32>
    %29 = vector.extract_strided_slice %1 {offsets = [0, 5], sizes = [8, 1], strides = [1, 1]} : vector<8x8xi32> to vector<8x1xi32>
    %30 = vector.broadcast %29 : vector<8x1xi32> to vector<8x128xi32>
    %31 = arith.cmpi eq, %2, %30 : vector<8x128xi32>
    %32 = arith.extui %31 : vector<8x128xi1> to vector<8x128xi32>
    %33 = arith.addi %28, %32 : vector<8x128xi32>
    %34 = vector.extract_strided_slice %1 {offsets = [0, 6], sizes = [8, 1], strides = [1, 1]} : vector<8x8xi32> to vector<8x1xi32>
    %35 = vector.broadcast %34 : vector<8x1xi32> to vector<8x128xi32>
    %36 = arith.cmpi eq, %2, %35 : vector<8x128xi32>
    %37 = arith.extui %36 : vector<8x128xi1> to vector<8x128xi32>
    %38 = arith.addi %33, %37 : vector<8x128xi32>
    %39 = vector.extract_strided_slice %1 {offsets = [0, 7], sizes = [8, 1], strides = [1, 1]} : vector<8x8xi32> to vector<8x1xi32>
    %40 = vector.broadcast %39 : vector<8x1xi32> to vector<8x128xi32>
    %41 = arith.cmpi eq, %2, %40 : vector<8x128xi32>
    %42 = arith.extui %41 : vector<8x128xi1> to vector<8x128xi32>
    %43 = arith.addi %38, %42 : vector<8x128xi32>
    %44 = arith.sitofp %43 : vector<8x128xi32> to vector<8x128xf32>
    %c0_1 = arith.constant 0 : index
    %c0_2 = arith.constant 0 : index
    %45 = vector.load %arg2[%c0_1, %c0_2] : memref<128x128xf32, #tpu.memory_space<vmem>>, vector<128x128xf32>
    %cst = arith.constant dense<0.000000e+00> : vector<8x128xf32>
    %46 = tpu.matmul %44, %45, %cst {dimension_numbers = #tpu.dot_dimension_numbers<[1], [0], [0], [1], [0, 0, 1, 1], [], []>} : vector<8x128xf32>, vector<128x128xf32>, vector<8x128xf32> -> vector<8x128xf32>
    %cst_3 = arith.constant 1.250000e-01 : f32
    %47 = vector.broadcast %cst_3 : f32 to vector<8x128xf32>
    %48 = arith.mulf %46, %47 : vector<8x128xf32>
    %c0_4 = arith.constant 0 : index
    %c0_5 = arith.constant 0 : index
    %49 = vector.load %arg3[%c0_4, %c0_5] : memref<128x128xf32, #tpu.memory_space<vmem>>, vector<128x128xf32>
    %cst_6 = arith.constant dense<0.000000e+00> : vector<8x128xf32>
    %50 = tpu.matmul %48, %49, %cst_6 {dimension_numbers = #tpu.dot_dimension_numbers<[1], [0], [0], [1], [0, 0, 1, 1], [], []>} : vector<8x128xf32>, vector<128x128xf32>, vector<8x128xf32> -> vector<8x128xf32>
    %c0_7 = arith.constant 0 : index
    %c0_8 = arith.constant 0 : index
    %51 = vector.load %arg4[%c0_7, %c0_8] : memref<1x128xf32, #tpu.memory_space<vmem>>, vector<1x128xf32>
    %52 = vector.broadcast %51 : vector<1x128xf32> to vector<8x128xf32>
    %53 = arith.addf %50, %52 : vector<8x128xf32>
    %c0_9 = arith.constant 0 : index
    %c0_10 = arith.constant 0 : index
    %54 = vector.load %arg5[%c0_9, %c0_10] : memref<8x128xf32, #tpu.memory_space<vmem>>, vector<8x128xf32>
    tpu.vector_store %arg5[%c0_9, %c0_10], %53 {strides = array<i32>} : memref<8x128xf32, #tpu.memory_space<vmem>>, vector<8x128xf32>,
    return
  }
  func.func @transform_0(%arg0: i32) -> (i32, i32) {
    %c0_i32 = arith.constant 0 : i32
    %c0_i32_0 = arith.constant 0 : i32
    return %arg0, %c0_i32 : i32, i32
  }
  func.func @transform_1(%arg0: i32) -> (i32, i32) {
    %c0_i32 = arith.constant 0 : i32
    %c0_i32_0 = arith.constant 0 : i32
    %c0_i32_1 = arith.constant 0 : i32
    return %c0_i32, %c0_i32_0 : i32, i32
  }
  func.func @transform_2(%arg0: i32) -> (i32, i32) {
    %c0_i32 = arith.constant 0 : i32
    %c0_i32_0 = arith.constant 0 : i32
    %c0_i32_1 = arith.constant 0 : i32
    return %c0_i32, %c0_i32_0 : i32, i32
  }
  func.func @transform_3(%arg0: i32) -> (i32, i32) {
    %c0_i32 = arith.constant 0 : i32
    %c0_i32_0 = arith.constant 0 : i32
    %c0_i32_1 = arith.constant 0 : i32
    return %c0_i32, %c0_i32_0 : i32, i32
  }
  func.func @transform_4(%arg0: i32) -> (i32, i32) {
    %c0_i32 = arith.constant 0 : i32
    %c0_i32_0 = arith.constant 0 : i32
    return %arg0, %c0_i32 : i32, i32
  }
}

</mosaic_0001>

<bundles_post_ra>
// kernel: _lambda_.1
= control target key start
LH: loop header
LB: loop body
LE: loop exit
PB: predicated region body
PF: predicated region fallthrough
CT: control target
= control target key end

     0   :  { %9 = vsyncpa [#allocation3], 0  ;;  %s325_s0 = inlined_call_operand.vmem [shape: f32[8,8], index: 0, kind: input, shape index: {}]   ;;  %s326_s1 = inlined_call_operand.hbm [shape: f32[128,128], index: 1, kind: input, shape index: {}]   ;;  %s327_s2 = inlined_call_operand.hbm [shape: f32[128,128], index: 2, kind: input, shape index: {}]   ;;  %s328_s3 = inlined_call_operand.vmem [shape: f32[1,128], index: 3, kind: input, shape index: {}]   ;;  %s329_s4 = inlined_call_operand.vmem [shape: f32[8,128], index: 4, kind: output, shape index: {}]  }
   0x1   :  { %s17_s17 = sshll.u32 %s326_s1, 4  ;;  %s18_s17 = int_to_ptr.hbm [resolvable:$true] %s17_s17 }
   0x2   :  { %10 = vsyncpa [#allocation5], 0  ;;  %s264_s18 = smov [#allocation2]   ;;  %s30_s22 = sshll.u32 %s327_s2, 4  ;;  %s31_s22 = int_to_ptr.hbm [resolvable:$true] %s30_s22 }
   0x3   :  { %s19_s19 = sshll.u32 %s264_s18, 4  ;;  %s265_s23 = smov 128   ;;  %s20_s19 = int_to_ptr.vmem [resolvable:$true] %s19_s19 }
   0x4   :  { %s266_s24 = smov 8   ;;  %s267_s25 = smov [#allocation4]  }
   0x5   :  { %25 = dma.hbm_to_vmem [thread:$0]  %s18_s17, 2048, %s20_s19, [#allocation3], %s265_s23, %s265_s23, %s266_s24  }
   0x6   :  { %s32_s26 = sshll.u32 %s267_s25, 4  ;;  %s33_s26 = int_to_ptr.vmem [resolvable:$true] %s32_s26 }
   0x7   :  { %38 = dma.hbm_to_vmem [thread:$0]  %s31_s22, 2048, %s33_s26, [#allocation5], %s265_s23, %s265_s23, %s266_s24  }
   0x8   :  { %260 = dma.done.wait [#allocation3], 2048  }
   0x9   :  { %261 = vsyncadd [#allocation3], 4294965248 }
   0xa   :  { %262 = dma.done.wait [#allocation5], 2048  }
   0xb   :  { %263 = vsyncadd [#allocation5], 4294965248  ;;  %v268_v0 = vmov 0   ;;  %v269_v1 = vmov 2   ;;  %v270_v2 = vmov 4   ;;  %v49_v3 = vld [vmem:[%s325_s0] sm:$0xff]  ;;  %v51_v33 = vlaneseq }
   0xc   :  { %202 = vset.pattern.permute.xlu0 %v268_v0  ;;  %204 = vset.pattern.permute.xlu1 %v269_v1  ;;  %v116_v4 = vld [vmem:[#allocation2 + $0x78] sm:$0xff]  ;;  %v115_v5 = vld [vmem:[#allocation2 + $0x70] sm:$0xff]  ;;  %vm185_vm0 = vcmp.lt.s32.totalorder %v49_v3, 0  ;;  %v186_v6 = vceil.f32 %v49_v3  ;;  %v187_v7 = vfloor.f32 %v49_v3  ;;  %v271_v10 = vmov 1   ;;  %v114_v15 = vld [vmem:[#allocation2 + $0x68] sm:$0xff] }
   0xd   :  { %206 = vset.pattern.permute.xlu2 %v270_v2  ;;  %117 = vmatpush.msra.mxu0 %v116_v4  ;;  %v272_v11 = vmov 3   ;;  %v273_v12 = vmov 5   ;;  %v274_v13 = vmov 6   ;;  %v275_v14 = vmov 7   ;;  %v113_v16 = vld [vmem:[#allocation2 + $0x60] sm:$0xff]  ;;  %v112_v17 = vld [vmem:[#allocation2 + $0x58] sm:$0xff] }
   0xe   :  { %v188_v8 = vsel %vm185_vm0, %v186_v6, %v187_v7  ;;  %v111_v18 = vld [vmem:[#allocation2 + $0x50] sm:$0xff]  ;;  %v110_v19 = vld [vmem:[#allocation2 + $0x48] sm:$0xff]  ;;  %v109_v20 = vld [vmem:[#allocation2 + $0x40] sm:$0xff]  ;;  %v52_v38 = vand.u32 127, %v51_v33 }
   0xf   :  { %118 = vmatpush.msra.mxu0 %v115_v5  ;;  %v189_v9 = vcvt.f32.s32 %v188_v8  ;;  %v108_v21 = vld [vmem:[#allocation2 + $0x38] sm:$0xff]  ;;  %v107_v22 = vld [vmem:[#allocation2 + $0x30] sm:$0xff]  ;;  %v106_v23 = vld [vmem:[#allocation2 + $0x28] sm:$0xff] }
  0x10   :  { %v105_v24 = vld [vmem:[#allocation2 + $0x20] sm:$0xff]  ;;  %v104_v25 = vld [vmem:[#allocation2 + $0x18] sm:$0xff]  ;;  %v103_v26 = vld [vmem:[#allocation2 + $0x10] sm:$0xff] }
  0x11   :  { %54 = vperm.xlu0 %202, %v189_v9   ;;  %65 = vperm.xlu1 %204, %v189_v9   ;;  %v102_v27 = vld [vmem:[#allocation2 + $0x8] sm:$0xff]  ;;  %v101_v28 = vld [vmem:[#allocation2] sm:$0xff]  ;;  %v153_v30 = vld [vmem:[#allocation4 + $0x78] sm:$0xff] }
  0x12   :  { %77 = vperm.xlu2 %206, %v189_v9   ;;  %119 = vmatpush.msra.mxu0 %v114_v15  ;;  %v152_v31 = vld [vmem:[#allocation4 + $0x70] sm:$0xff]  ;;  %v151_v32 = vld [vmem:[#allocation4 + $0x68] sm:$0xff]  ;;  %v150_v36 = vld [vmem:[#allocation4 + $0x60] sm:$0xff] }
  0x13   :  { %158 = vmatpush.msra.mxu1 %v153_v30  ;;  %v149_v37 = vld [vmem:[#allocation4 + $0x58] sm:$0xff]  ;;  %v148_v39 = vld [vmem:[#allocation4 + $0x50] sm:$0xff]  ;;  %v147_v41 = vld [vmem:[#allocation4 + $0x48] sm:$0xff] }
  0x14   :  { %120 = vmatpush.msra.mxu0 %v113_v16  ;;  %v146_v42 = vld [vmem:[#allocation4 + $0x40] sm:$0xff]  ;;  %v145_v45 = vld [vmem:[#allocation4 + $0x38] sm:$0xff]  ;;  %v144_v49 = vld [vmem:[#allocation4 + $0x30] sm:$0xff] }
  0x15   :  { %159 = vmatpush.msra.mxu1 %v152_v31  ;;  %v143_v52 = vld [vmem:[#allocation4 + $0x28] sm:$0xff]  ;;  %v142_v56 = vld [vmem:[#allocation4 + $0x20] sm:$0xff]  ;;  %v141_v60 = vld [vmem:[#allocation4 + $0x18] sm:$0xff] }
  0x16   :  { %121 = vmatpush.msra.mxu0 %v112_v17  ;;  %v140_v1 = vld [vmem:[#allocation4 + $0x10] sm:$0xff]  ;;  %v139_v6 = vld [vmem:[#allocation4 + $0x8] sm:$0xff]  ;;  %v138_v7 = vld [vmem:[#allocation4] sm:$0xff] }
  0x17   :  { %160 = vmatpush.msra.mxu1 %v151_v32 }
  0x18   :  { %122 = vmatpush.msra.mxu0 %v111_v18 }
  0x19   :  { %203 = vset.pattern.permute.xlu0 %v271_v10  ;;  %205 = vset.pattern.permute.xlu1 %v272_v11  ;;  %v211_v10 = vld [vmem:[%s328_s3] ss:$0 sm:$0xff] }
  0x1a   :  { %59 = vperm.xlu0 %203, %v189_v9   ;;  %71 = vperm.xlu1 %205, %v189_v9  }
  0x1b   :  { %207 = vset.pattern.permute.xlu2 %v273_v12  ;;  %123 = vmatpush.msra.mxu0 %v110_v19 }
  0x1c   :  { %83 = vperm.xlu2 %207, %v189_v9   ;;  %161 = vmatpush.msra.mxu1 %v150_v36 }
  0x1d   :  { %124 = vmatpush.msra.mxu0 %v109_v20 }
  0x1e   :  { %162 = vmatpush.msra.mxu1 %v149_v37 }
  0x1f   :  { %125 = vmatpush.msra.mxu0 %v108_v21 }
  0x20   :  { %163 = vmatpush.msra.mxu1 %v148_v39 }
  0x21   :  { %126 = vmatpush.msra.mxu0 %v107_v22 }
  0x22   :  { %208 = vset.pattern.permute.xlu1 %v274_v13  ;;  %210 = vset.pattern.permute.xlu0 %v275_v14 }
  0x23   :  { %89 = vperm.xlu1 %208, %v189_v9   ;;  %127 = vmatpush.msra.mxu0 %v106_v23 }
  0x24   :  { %209 = vset.pattern.permute.xlu2 %v275_v14  ;;  %164 = vmatpush.msra.mxu1 %v147_v41 }
  0x25   :  { %95 = vperm.xlu2 %209, %v189_v9   ;;  %128 = vmatpush.msra.mxu0 %v105_v24 }
  0x26   :  { %165 = vmatpush.msra.mxu1 %v146_v42 }
  0x27   :  { %129 = vmatpush.msra.mxu0 %v104_v25 }
  0x28   :  { %166 = vmatpush.msra.mxu1 %v145_v45 }
  0x29   :  { %130 = vmatpush.msra.mxu0 %v103_v26 }
  0x2a   :  { %167 = vmatpush.msra.mxu1 %v144_v49 }
  0x2b   :  { %131 = vmatpush.msra.mxu0 %v102_v27 }
  0x2c   :  { %168 = vmatpush.msra.mxu1 %v143_v52 }
  0x2d   :  { %132 = vmatpush.msra.mxu0 %v101_v28 }
  0x2e   :  { %169 = vmatpush.msra.mxu1 %v142_v56 }
  0x30   :  { %170 = vmatpush.msra.mxu1 %v141_v60 }
  0x32   :  { %171 = vmatpush.msra.mxu1 %v140_v1 }
  0x34   :  { %172 = vmatpush.msra.mxu1 %v139_v6 }
  0x36   :  { %173 = vmatpush.msra.mxu1 %v138_v7 }
  0x6c   :  { %v78_v29 = vpop.permute.xlu2 %77 }
  0x6d   :  { %vm79_vm5 = vcmp.eq.s32.totalorder %v52_v38, %v78_v29 }
  0x6e   :  { %v80_v57 = vsel %vm79_vm5, 1, %v268_v0 }
  0x76   :  { %v84_v40 = vpop.permute.xlu2 %83 }
  0x77   :  { %vm85_vm6 = vcmp.eq.s32.totalorder %v52_v38, %v84_v40 }
  0x78   :  { %v86_v61 = vsel %vm85_vm6, 1, %v268_v0 }
  0x7f   :  { %v96_v54 = vpop.permute.xlu2 %95 }
  0x80   :  { %vm97_vm7 = vcmp.eq.s32.totalorder %v52_v38, %v96_v54 }
  0x81   :  { %v98_v2 = vsel %vm97_vm7, 1, %v268_v0 }
  0x83   :  { %v55_v34 = vpop.permute.xlu0 %54  ;;  %v66_v35 = vpop.permute.xlu1 %65 }
  0x84   :  { %vm56_vm1 = vcmp.eq.s32.totalorder %v52_v38, %v55_v34  ;;  %vm67_vm2 = vcmp.eq.s32.totalorder %v52_v38, %v66_v35 }
  0x85   :  { %v57_v46 = vsel %vm56_vm1, 1, %v268_v0  ;;  %v68_v50 = vsel %vm67_vm2, 1, %v268_v0 }
  0x8c   :  { %v60_v43 = vpop.permute.xlu0 %59  ;;  %v72_v44 = vpop.permute.xlu1 %71 }
  0x8d   :  { %vm61_vm3 = vcmp.eq.s32.totalorder %v52_v38, %v60_v43  ;;  %vm73_vm4 = vcmp.eq.s32.totalorder %v52_v38, %v72_v44 }
  0x8e   :  { %v62_v47 = vsel %vm61_vm3, 1, %v268_v0  ;;  %v74_v53 = vsel %vm73_vm4, 1, %v268_v0 }
  0x8f   :  { %v63_v48 = vadd.s32 %v62_v47, %v57_v46 }
  0x91   :  { %v69_v51 = vadd.s32 %v68_v50, %v63_v48 }
  0x93   :  { %v75_v55 = vadd.s32 %v74_v53, %v69_v51 }
  0x95   :  { %v81_v58 = vadd.s32 %v80_v57, %v75_v55  ;;  %v90_v59 = vpop.permute.xlu1 %89 }
  0x96   :  { %vm91_vm8 = vcmp.eq.s32.totalorder %v52_v38, %v90_v59 }
  0x97   :  { %v87_v62 = vadd.s32 %v86_v61, %v81_v58  ;;  %v92_v63 = vsel %vm91_vm8, 1, %v268_v0 }
  0x99   :  { %v93_v3 = vadd.s32 %v92_v63, %v87_v62 }
  0x9b   :  { %v99_v4 = vadd.s32 %v98_v2, %v93_v3 }
  0x9d   :  { %v100_v5 = vcvt.s32.f32 %v99_v4 }
  0x9f   :  { %133 = vmatmul.f32.vlgmr.msra.gmra.mxu0 %v100_v5 }
 0x11c   :  { %v134_v8 = vpop.f32.mrf.mxu0 }
 0x11d   :  { %v137_v9 = vmul.f32 0.125, %v134_v8 }
 0x11f   :  { %174 = vmatmul.f32.vlgmr.msra.gmra.mxu1 %v137_v9 }
 0x19c   :  { %v175_v11 = vpop.f32.mrf.mxu1 }
 0x19d   :  { %v176_v12 = vadd.f32 %v211_v10, %v175_v11 }
 0x19f   :  { %178 = vst [vmem:[%s329_s4] sm:$0xff] %v176_v12 }
 0x1a0   :  { %183 = vsyncpa [#allocation3], 1 }
 0x1a1   :  { %184 = vsyncpa [#allocation5], 1 }

</bundles_post_ra>
